<compile_context>
chip_gen: v6e
topology: v6e:2x2x1
jax: 0.10.0
libtpu: 0.0.40
codegen_flags: <defaults>
</compile_context>

<pallas_src>
import functools

import jax
import jax.numpy as jnp
from jax.experimental import pallas as pl
from jax.experimental.pallas import tpu as pltpu

LANE = 128  # TPU vreg lane width


def _round_up(x, m):
    return ((x + m - 1) // m) * m


def _device_info():
    """Returns (is_v7x, num_tensorcores, vmem_cap_bytes)."""
    try:
        kind = jax.devices()[0].device_kind.lower()
    except Exception:
        kind = ""
    is_v7x = ("v7" in kind) or ("7x" in kind)
    num_tc = 2 if is_v7x else 1
    # Leave headroom below physical VMEM: 64 MiB on v7x, 128 MiB on v5e/v6e.
    vmem_cap = (48 << 20) if is_v7x else (100 << 20)
    return is_v7x, num_tc, vmem_cap


def _vmem_estimate(tm, din, padded_params, out_bytes_per_elem,
                   single_buffer_weights):
    """Resident VMEM: weights/biases, pipelined in/out tiles, live activations."""
    wt_mult = 1 if single_buffer_weights else 2
    weight_bytes = sum(w.size * w.dtype.itemsize + b.size * b.dtype.itemsize
                       for w, b in padded_params)
    dlast_pad = padded_params[-1][0].shape[1]
    max_dpad = max(w.shape[1] for w, _ in padded_params)
    in_bytes = 2 * tm * din * 4                          # double-buffered input tile
    out_bytes = 2 * tm * dlast_pad * out_bytes_per_elem  # double-buffered output tile
    interm_bytes = tm * max_dpad * (2 + 4)               # live h (bf16) + acc (f32)
    return wt_mult * weight_bytes + in_bytes + out_bytes + interm_bytes


def _choose_tm(batch, num_tc, din, padded_params, out_bytes_per_elem,
               vmem_cap, single_buffer_weights, max_tm=1024):
    """Pick the batch tile:
      * as large as possible (amortize ~0.35us/step overhead), up to max_tm,
      * >= num_tc grid steps when the batch allows it (only matters on v7x),
      * estimated VMEM footprint under the per-generation cap,
      * single-step grids use tm == batch (full-dim block, no batch padding)."""
    tm = min(max_tm, _round_up(max(batch, 1), 8))
    while tm > 8 and pl.cdiv(batch, tm) < num_tc:
        tm //= 2
    while tm > 8 and _vmem_estimate(tm, din, padded_params, out_bytes_per_elem,
                                    single_buffer_weights) > vmem_cap:
        tm //= 2
    tm = max(8, (tm // 8) * 8)
    if pl.cdiv(batch, tm) <= 1:
        tm = batch  # block == full batch dim -> (8,128) rule satisfied, no pad
    return tm


def _fused_mlp_kernel(num_layers, x_ref, *refs):
    """h = relu(h @ W_l + b_l) for all layers, entirely in VMEM/vregs.

    refs = (w0, b0, w1, b1, ..., w_{L-1}, b_{L-1}, o_ref)
      x_ref : (tm, din)            input tile, original dtype (cast here)
      w_l   : (k_pad, dout_pad)    bf16, whole weight resident in VMEM
      b_l   : (1, dout_pad)        f32 bias row
      o_ref : (tm, dlast_pad)      bf16 output tile
    """
    o_ref = refs[2 * num_layers]
    h = x_ref[...].astype(jnp.bfloat16)  # in-kernel cast: no wrapper pre-pass
    acc = None
    for l in range(num_layers):
        w = refs[2 * l]
        b = refs[2 * l + 1]
        # MXU matmul with f32 accumulation; bias + ReLU on the VPU in f32.
        acc = jnp.dot(h, w[...], preferred_element_type=jnp.float32)
        acc = jnp.maximum(acc + b[...], 0.0)
        if l + 1 < num_layers:
            h = acc.astype(jnp.bfloat16)  # back to bf16 for the next MXU pass
    o_ref[...] = acc.astype(o_ref.dtype)


def _const_block_spec(shape, single_buffer):
    """Grid-invariant block (weights/biases): constant index_map; optionally
    single-buffered so resident weight VMEM is not doubled."""
    index_map = lambda i: (0,) * len(shape)
    if single_buffer:
        return pl.BlockSpec(shape, index_map, pipeline_mode=pl.Buffered(1))
    return pl.BlockSpec(shape, index_map)


def fused_bottom_mlp(x, padded_params, *, single_buffer_weights=True,
                     out_dtype=jnp.bfloat16):
    """Run the whole BottomMLP as one pallas_call.

    x             : (batch, din), any float dtype, fed AS-IS (no cast/pad pre-pass).
    padded_params : [(W_bf16, b_f32_row)] from prepare_params(); layer-0 K is
                    unpadded, all output dims are 128-lane padded.
    Returns padded (m_pad, dlast_pad) output in `out_dtype`; caller slices.
    """
    batch, din = x.shape
    num_layers = len(padded_params)
    assert num_layers >= 1, "BottomMLP needs at least one Linear layer"
    assert padded_params[0][0].shape[0] == din, "layer-0 K must equal input dim"
    dlast_pad = padded_params[-1][0].shape[1]

    _, num_tc, vmem_cap = _device_info()
    out_bytes_per_elem = jnp.dtype(out_dtype).itemsize
    tm = _choose_tm(batch, num_tc, din, padded_params, out_bytes_per_elem,
                    vmem_cap, single_buffer_weights)
    m_pad = _round_up(batch, tm)
    if m_pad > batch:
        # Only hit when batch is not a multiple of a multi-step tile.
        x = jnp.pad(x, ((0, m_pad - batch), (0, 0)))
    grid = (m_pad // tm,)

    in_specs = [pl.BlockSpec((tm, din), lambda i: (i, 0))]
    flat_params = []
    for w, b in padded_params:
        in_specs.append(_const_block_spec(w.shape, single_buffer_weights))
        in_specs.append(_const_block_spec(b.shape, single_buffer_weights))
        flat_params += [w, b]

    vmem_limit = max(
        32 << 20,  # v5e's default scoped limit is only 16 MiB; keep the floor
        min(vmem_cap,
            int(1.5 * _vmem_estimate(tm, din, padded_params, out_bytes_per_elem,
                                     single_buffer_weights)) + (4 << 20)))

    kernel = functools.partial(_fused_mlp_kernel, num_layers)
    return pl.pallas_call(
        kernel,
        out_shape=jax.ShapeDtypeStruct((m_pad, dlast_pad), out_dtype),
        grid_spec=pltpu.PrefetchScalarGridSpec(
            num_scalar_prefetch=0,
            grid=grid,
            in_specs=in_specs,
            out_specs=pl.BlockSpec((tm, dlast_pad), lambda i: (i, 0)),
        ),
        compiler_params=pltpu.CompilerParams(
            dimension_semantics=("parallel",),
            vmem_limit_bytes=vmem_limit,
        ),
    )(x, *flat_params)


def init_bottom_mlp_params(key, input_dim, layer_sizes, dtype=jnp.float32):
    """nn.Linear-style init. Returns [(W (in,out), b (out,))], f32, unpadded."""
    params = []
    din = input_dim
    for dout in layer_sizes:
        key, kw, kb = jax.random.split(key, 3)
        bound = 1.0 / (din ** 0.5)
        w = jax.random.uniform(kw, (din, dout), dtype, -bound, bound)
        b = jax.random.uniform(kb, (dout,), dtype, -bound, bound)
        params.append((w, b))
        din = dout
    return params


def prepare_params(params):
    """Convert f32 (W (in,out), b (out,)) into MXU-friendly padded blocks.

    * Output dims are zero-padded to 128-lane multiples (lane-dense MXU columns
      and unmasked stores).  Padded columns have zero weight and bias, so
      relu(0) = 0, which then feeds zero rows of the next layer -> exact.
    * Layer 0 keeps its K dim UNPADDED so x is read straight from HBM with no
      wrapper-side pad; layers > 0 pad K to the previous layer's padded width.
    * Weights -> bf16 (MXU inputs), biases -> f32 rows (added on the f32 acc).
    """
    padded = []
    for idx, (w, b) in enumerate(params):
        din, dout = w.shape
        dip = din if idx == 0 else _round_up(din, LANE)
        dop = _round_up(dout, LANE)
        wp = jnp.zeros((dip, dop), jnp.bfloat16).at[:din, :dout].set(
            w.astype(jnp.bfloat16))
        bp = jnp.zeros((1, dop), jnp.float32).at[0, :dout].set(
            b.astype(jnp.float32))
        padded.append((wp, bp))
    return padded


@functools.partial(jax.jit,
                   static_argnames=("out_features", "single_buffer_weights"))
def _forward_impl(x, padded_params, out_features, single_buffer_weights):
    batch = x.shape[0]
    y_pad = fused_bottom_mlp(x, padded_params,
                             single_buffer_weights=single_buffer_weights)
    # Un-pad and return f32 (cheap: only batch x out_features elements).
    return y_pad[:batch, :out_features].astype(jnp.float32)


def bottom_mlp_forward(x, padded_params, out_features):
    """Full BottomMLP forward as one fused Pallas kernel.

    Tries single-buffered (pl.Buffered(1)) grid-invariant weight blocks first
    (halves resident weight VMEM); falls back to default double buffering if
    this jax build's pallas_call rejects pipeline_mode, so it always runs.
    """
    try:
        return _forward_impl(x, padded_params, out_features, True)
    except Exception:
        return _forward_impl(x, padded_params, out_features, False)


def bottom_mlp_reference(x, params):
    """Pure-JAX f32 reference (matches the PyTorch module semantics)."""
    h = x
    for w, b in params:
        h = jnp.maximum(h @ w + b[None, :], 0.0)
    return h


if __name__ == "__main__":
    key = jax.random.PRNGKey(0)
    k_x, k_p = jax.random.split(key)

    batch = 64
    input_dim = 16
    layer_sizes = [32, 64, 8]

    x = jax.random.normal(k_x, (batch, input_dim), jnp.float32)
    params = init_bottom_mlp_params(k_p, input_dim, layer_sizes)
    padded_params = prepare_params(params)

    out = bottom_mlp_forward(x, padded_params, out_features=layer_sizes[-1])
    out = jax.block_until_ready(out)

    ref = bottom_mlp_reference(x, params)
    assert out.shape == (batch, layer_sizes[-1])
    # bf16 weights/activations with f32 accumulation + bf16 output tile:
    # allow ~3% tolerance vs the pure-f32 reference.
    assert jnp.allclose(out, ref, atol=3e-2, rtol=3e-2), "mismatch vs reference"

    print("KERNEL_OK")
</pallas_src>

<mosaic_0001>
module attributes {stable_mosaic.version = 11 : i64} {
  func.func @_fused_mlp_kernel(%arg0: i32, %arg1: memref<64x16xf32, #tpu.memory_space<vmem>>, %arg2: memref<16x128xbf16, #tpu.memory_space<vmem>>, %arg3: memref<1x128xf32, #tpu.memory_space<vmem>>, %arg4: memref<128x128xbf16, #tpu.memory_space<vmem>>, %arg5: memref<1x128xf32, #tpu.memory_space<vmem>>, %arg6: memref<128x128xbf16, #tpu.memory_space<vmem>>, %arg7: memref<1x128xf32, #tpu.memory_space<vmem>>, %arg8: memref<64x128xbf16, #tpu.memory_space<vmem>>) attributes {dimension_semantics = [#tpu.dimension_semantics<parallel>], iteration_bounds = array<i64: 1>, scalar_prefetch = 0 : i64, scratch_operands = 0 : i64, tpu.core_type = #tpu.core_type<tc>, window_params = [{transform_indices = @transform_0, window_bounds = array<i64: 64, 16>}, {pipeline_mode = #tpu.pipeline_mode<synchronous>, transform_indices = @transform_1, window_bounds = array<i64: 16, 128>}, {pipeline_mode = #tpu.pipeline_mode<synchronous>, transform_indices = @transform_2, window_bounds = array<i64: 1, 128>}, {pipeline_mode = #tpu.pipeline_mode<synchronous>, transform_indices = @transform_3, window_bounds = array<i64: 128, 128>}, {pipeline_mode = #tpu.pipeline_mode<synchronous>, transform_indices = @transform_4, window_bounds = array<i64: 1, 128>}, {pipeline_mode = #tpu.pipeline_mode<synchronous>, transform_indices = @transform_5, window_bounds = array<i64: 128, 128>}, {pipeline_mode = #tpu.pipeline_mode<synchronous>, transform_indices = @transform_6, window_bounds = array<i64: 1, 128>}, {transform_indices = @transform_7, window_bounds = array<i64: 64, 128>}]} {
    %c0 = arith.constant 0 : index
    %c0_0 = arith.constant 0 : index
    %0 = vector.load %arg1[%c0, %c0_0] : memref<64x16xf32, #tpu.memory_space<vmem>>, vector<64x16xf32>
    %1 = arith.truncf %0 : vector<64x16xf32> to vector<64x16xbf16>
    %c0_1 = arith.constant 0 : index
    %c0_2 = arith.constant 0 : index
    %2 = vector.load %arg2[%c0_1, %c0_2] : memref<16x128xbf16, #tpu.memory_space<vmem>>, vector<16x128xbf16>
    %cst = arith.constant dense<0.000000e+00> : vector<64x128xf32>
    %3 = tpu.matmul %1, %2, %cst {dimension_numbers = #tpu.dot_dimension_numbers<[1], [0], [0], [1], [0, 0, 1, 1], [], []>} : vector<64x16xbf16>, vector<16x128xbf16>, vector<64x128xf32> -> vector<64x128xf32>
    %c0_3 = arith.constant 0 : index
    %c0_4 = arith.constant 0 : index
    %4 = vector.load %arg3[%c0_3, %c0_4] : memref<1x128xf32, #tpu.memory_space<vmem>>, vector<1x128xf32>
    %5 = vector.broadcast %4 : vector<1x128xf32> to vector<64x128xf32>
    %6 = arith.addf %3, %5 : vector<64x128xf32>
    %cst_5 = arith.constant 0.000000e+00 : f32
    %7 = vector.broadcast %cst_5 : f32 to vector<64x128xf32>
    %8 = arith.maximumf %6, %7 : vector<64x128xf32>
    %9 = arith.truncf %8 : vector<64x128xf32> to vector<64x128xbf16>
    %c0_6 = arith.constant 0 : index
    %c0_7 = arith.constant 0 : index
    %10 = vector.load %arg4[%c0_6, %c0_7] : memref<128x128xbf16, #tpu.memory_space<vmem>>, vector<128x128xbf16>
    %cst_8 = arith.constant dense<0.000000e+00> : vector<64x128xf32>
    %11 = tpu.matmul %9, %10, %cst_8 {dimension_numbers = #tpu.dot_dimension_numbers<[1], [0], [0], [1], [0, 0, 1, 1], [], []>} : vector<64x128xbf16>, vector<128x128xbf16>, vector<64x128xf32> -> vector<64x128xf32>
    %c0_9 = arith.constant 0 : index
    %c0_10 = arith.constant 0 : index
    %12 = vector.load %arg5[%c0_9, %c0_10] : memref<1x128xf32, #tpu.memory_space<vmem>>, vector<1x128xf32>
    %13 = vector.broadcast %12 : vector<1x128xf32> to vector<64x128xf32>
    %14 = arith.addf %11, %13 : vector<64x128xf32>
    %cst_11 = arith.constant 0.000000e+00 : f32
    %15 = vector.broadcast %cst_11 : f32 to vector<64x128xf32>
    %16 = arith.maximumf %14, %15 : vector<64x128xf32>
    %17 = arith.truncf %16 : vector<64x128xf32> to vector<64x128xbf16>
    %c0_12 = arith.constant 0 : index
    %c0_13 = arith.constant 0 : index
    %18 = vector.load %arg6[%c0_12, %c0_13] : memref<128x128xbf16, #tpu.memory_space<vmem>>, vector<128x128xbf16>
    %cst_14 = arith.constant dense<0.000000e+00> : vector<64x128xf32>
    %19 = tpu.matmul %17, %18, %cst_14 {dimension_numbers = #tpu.dot_dimension_numbers<[1], [0], [0], [1], [0, 0, 1, 1], [], []>} : vector<64x128xbf16>, vector<128x128xbf16>, vector<64x128xf32> -> vector<64x128xf32>
    %c0_15 = arith.constant 0 : index
    %c0_16 = arith.constant 0 : index
    %20 = vector.load %arg7[%c0_15, %c0_16] : memref<1x128xf32, #tpu.memory_space<vmem>>, vector<1x128xf32>
    %21 = vector.broadcast %20 : vector<1x128xf32> to vector<64x128xf32>
    %22 = arith.addf %19, %21 : vector<64x128xf32>
    %cst_17 = arith.constant 0.000000e+00 : f32
    %23 = vector.broadcast %cst_17 : f32 to vector<64x128xf32>
    %24 = arith.maximumf %22, %23 : vector<64x128xf32>
    %25 = arith.truncf %24 : vector<64x128xf32> to vector<64x128xbf16>
    %c0_18 = arith.constant 0 : index
    %c0_19 = arith.constant 0 : index
    %26 = vector.load %arg8[%c0_18, %c0_19] : memref<64x128xbf16, #tpu.memory_space<vmem>>, vector<64x128xbf16>
    tpu.vector_store %arg8[%c0_18, %c0_19], %25 {strides = array<i32>} : memref<64x128xbf16, #tpu.memory_space<vmem>>, vector<64x128xbf16>,
    return
  }
  func.func @transform_0(%arg0: i32) -> (i32, i32) {
    %c0_i32 = arith.constant 0 : i32
    %c0_i32_0 = arith.constant 0 : i32
    return %arg0, %c0_i32 : i32, i32
  }
  func.func @transform_1(%arg0: i32) -> (i32, i32) {
    %c0_i32 = arith.constant 0 : i32
    %c0_i32_0 = arith.constant 0 : i32
    %c0_i32_1 = arith.constant 0 : i32
    return %c0_i32, %c0_i32_0 : i32, i32
  }
  func.func @transform_2(%arg0: i32) -> (i32, i32) {
    %c0_i32 = arith.constant 0 : i32
    %c0_i32_0 = arith.constant 0 : i32
    %c0_i32_1 = arith.constant 0 : i32
    return %c0_i32, %c0_i32_0 : i32, i32
  }
  func.func @transform_3(%arg0: i32) -> (i32, i32) {
    %c0_i32 = arith.constant 0 : i32
    %c0_i32_0 = arith.constant 0 : i32
    %c0_i32_1 = arith.constant 0 : i32
    return %c0_i32, %c0_i32_0 : i32, i32
  }
  func.func @transform_4(%arg0: i32) -> (i32, i32) {
    %c0_i32 = arith.constant 0 : i32
    %c0_i32_0 = arith.constant 0 : i32
    %c0_i32_1 = arith.constant 0 : i32
    return %c0_i32, %c0_i32_0 : i32, i32
  }
  func.func @transform_5(%arg0: i32) -> (i32, i32) {
    %c0_i32 = arith.constant 0 : i32
    %c0_i32_0 = arith.constant 0 : i32
    %c0_i32_1 = arith.constant 0 : i32
    return %c0_i32, %c0_i32_0 : i32, i32
  }
  func.func @transform_6(%arg0: i32) -> (i32, i32) {
    %c0_i32 = arith.constant 0 : i32
    %c0_i32_0 = arith.constant 0 : i32
    %c0_i32_1 = arith.constant 0 : i32
    return %c0_i32, %c0_i32_0 : i32, i32
  }
  func.func @transform_7(%arg0: i32) -> (i32, i32) {
    %c0_i32 = arith.constant 0 : i32
    %c0_i32_0 = arith.constant 0 : i32
    return %arg0, %c0_i32 : i32, i32
  }
}

module attributes {stable_mosaic.version = 11 : i64} {
  func.func @_fused_mlp_kernel(%arg0: i32, %arg1: memref<64x16xf32, #tpu.memory_space<vmem>>, %arg2: memref<16x128xbf16, #tpu.memory_space<vmem>>, %arg3: memref<1x128xf32, #tpu.memory_space<vmem>>, %arg4: memref<128x128xbf16, #tpu.memory_space<vmem>>, %arg5: memref<1x128xf32, #tpu.memory_space<vmem>>, %arg6: memref<128x128xbf16, #tpu.memory_space<vmem>>, %arg7: memref<1x128xf32, #tpu.memory_space<vmem>>, %arg8: memref<64x128xbf16, #tpu.memory_space<vmem>>) attributes {dimension_semantics = [#tpu.dimension_semantics<parallel>], iteration_bounds = array<i64: 1>, scalar_prefetch = 0 : i64, scratch_operands = 0 : i64, tpu.core_type = #tpu.core_type<tc>, window_params = [{transform_indices = @transform_0, window_bounds = array<i64: 64, 16>}, {pipeline_mode = #tpu.pipeline_mode<synchronous>, transform_indices = @transform_1, window_bounds = array<i64: 16, 128>}, {pipeline_mode = #tpu.pipeline_mode<synchronous>, transform_indices = @transform_2, window_bounds = array<i64: 1, 128>}, {pipeline_mode = #tpu.pipeline_mode<synchronous>, transform_indices = @transform_3, window_bounds = array<i64: 128, 128>}, {pipeline_mode = #tpu.pipeline_mode<synchronous>, transform_indices = @transform_4, window_bounds = array<i64: 1, 128>}, {pipeline_mode = #tpu.pipeline_mode<synchronous>, transform_indices = @transform_5, window_bounds = array<i64: 128, 128>}, {pipeline_mode = #tpu.pipeline_mode<synchronous>, transform_indices = @transform_6, window_bounds = array<i64: 1, 128>}, {transform_indices = @transform_7, window_bounds = array<i64: 64, 128>}]} {
    %c0 = arith.constant 0 : index
    %c0_0 = arith.constant 0 : index
    %0 = vector.load %arg1[%c0, %c0_0] : memref<64x16xf32, #tpu.memory_space<vmem>>, vector<64x16xf32>
    %1 = arith.truncf %0 : vector<64x16xf32> to vector<64x16xbf16>
    %c0_1 = arith.constant 0 : index
    %c0_2 = arith.constant 0 : index
    %2 = vector.load %arg2[%c0_1, %c0_2] : memref<16x128xbf16, #tpu.memory_space<vmem>>, vector<16x128xbf16>
    %cst = arith.constant dense<0.000000e+00> : vector<64x128xf32>
    %3 = tpu.matmul %1, %2, %cst {dimension_numbers = #tpu.dot_dimension_numbers<[1], [0], [0], [1], [0, 0, 1, 1], [], []>} : vector<64x16xbf16>, vector<16x128xbf16>, vector<64x128xf32> -> vector<64x128xf32>
    %c0_3 = arith.constant 0 : index
    %c0_4 = arith.constant 0 : index
    %4 = vector.load %arg3[%c0_3, %c0_4] : memref<1x128xf32, #tpu.memory_space<vmem>>, vector<1x128xf32>
    %5 = vector.broadcast %4 : vector<1x128xf32> to vector<64x128xf32>
    %6 = arith.addf %3, %5 : vector<64x128xf32>
    %cst_5 = arith.constant 0.000000e+00 : f32
    %7 = vector.broadcast %cst_5 : f32 to vector<64x128xf32>
    %8 = arith.maximumf %6, %7 : vector<64x128xf32>
    %9 = arith.truncf %8 : vector<64x128xf32> to vector<64x128xbf16>
    %c0_6 = arith.constant 0 : index
    %c0_7 = arith.constant 0 : index
    %10 = vector.load %arg4[%c0_6, %c0_7] : memref<128x128xbf16, #tpu.memory_space<vmem>>, vector<128x128xbf16>
    %cst_8 = arith.constant dense<0.000000e+00> : vector<64x128xf32>
    %11 = tpu.matmul %9, %10, %cst_8 {dimension_numbers = #tpu.dot_dimension_numbers<[1], [0], [0], [1], [0, 0, 1, 1], [], []>} : vector<64x128xbf16>, vector<128x128xbf16>, vector<64x128xf32> -> vector<64x128xf32>
    %c0_9 = arith.constant 0 : index
    %c0_10 = arith.constant 0 : index
    %12 = vector.load %arg5[%c0_9, %c0_10] : memref<1x128xf32, #tpu.memory_space<vmem>>, vector<1x128xf32>
    %13 = vector.broadcast %12 : vector<1x128xf32> to vector<64x128xf32>
    %14 = arith.addf %11, %13 : vector<64x128xf32>
    %cst_11 = arith.constant 0.000000e+00 : f32
    %15 = vector.broadcast %cst_11 : f32 to vector<64x128xf32>
    %16 = arith.maximumf %14, %15 : vector<64x128xf32>
    %17 = arith.truncf %16 : vector<64x128xf32> to vector<64x128xbf16>
    %c0_12 = arith.constant 0 : index
    %c0_13 = arith.constant 0 : index
    %18 = vector.load %arg6[%c0_12, %c0_13] : memref<128x128xbf16, #tpu.memory_space<vmem>>, vector<128x128xbf16>
    %cst_14 = arith.constant dense<0.000000e+00> : vector<64x128xf32>
    %19 = tpu.matmul %17, %18, %cst_14 {dimension_numbers = #tpu.dot_dimension_numbers<[1], [0], [0], [1], [0, 0, 1, 1], [], []>} : vector<64x128xbf16>, vector<128x128xbf16>, vector<64x128xf32> -> vector<64x128xf32>
    %c0_15 = arith.constant 0 : index
    %c0_16 = arith.constant 0 : index
    %20 = vector.load %arg7[%c0_15, %c0_16] : memref<1x128xf32, #tpu.memory_space<vmem>>, vector<1x128xf32>
    %21 = vector.broadcast %20 : vector<1x128xf32> to vector<64x128xf32>
    %22 = arith.addf %19, %21 : vector<64x128xf32>
    %cst_17 = arith.constant 0.000000e+00 : f32
    %23 = vector.broadcast %cst_17 : f32 to vector<64x128xf32>
    %24 = arith.maximumf %22, %23 : vector<64x128xf32>
    %25 = arith.truncf %24 : vector<64x128xf32> to vector<64x128xbf16>
    %c0_18 = arith.constant 0 : index
    %c0_19 = arith.constant 0 : index
    %26 = vector.load %arg8[%c0_18, %c0_19] : memref<64x128xbf16, #tpu.memory_space<vmem>>, vector<64x128xbf16>
    tpu.vector_store %arg8[%c0_18, %c0_19], %25 {strides = array<i32>} : memref<64x128xbf16, #tpu.memory_space<vmem>>, vector<64x128xbf16>,
    return
  }
  func.func @transform_0(%arg0: i32) -> (i32, i32) {
    %c0_i32 = arith.constant 0 : i32
    %c0_i32_0 = arith.constant 0 : i32
    return %arg0, %c0_i32 : i32, i32
  }
  func.func @transform_1(%arg0: i32) -> (i32, i32) {
    %c0_i32 = arith.constant 0 : i32
    %c0_i32_0 = arith.constant 0 : i32
    %c0_i32_1 = arith.constant 0 : i32
    return %c0_i32, %c0_i32_0 : i32, i32
  }
  func.func @transform_2(%arg0: i32) -> (i32, i32) {
    %c0_i32 = arith.constant 0 : i32
    %c0_i32_0 = arith.constant 0 : i32
    %c0_i32_1 = arith.constant 0 : i32
    return %c0_i32, %c0_i32_0 : i32, i32
  }
  func.func @transform_3(%arg0: i32) -> (i32, i32) {
    %c0_i32 = arith.constant 0 : i32
    %c0_i32_0 = arith.constant 0 : i32
    %c0_i32_1 = arith.constant 0 : i32
    return %c0_i32, %c0_i32_0 : i32, i32
  }
  func.func @transform_4(%arg0: i32) -> (i32, i32) {
    %c0_i32 = arith.constant 0 : i32
    %c0_i32_0 = arith.constant 0 : i32
    %c0_i32_1 = arith.constant 0 : i32
    return %c0_i32, %c0_i32_0 : i32, i32
  }
  func.func @transform_5(%arg0: i32) -> (i32, i32) {
    %c0_i32 = arith.constant 0 : i32
    %c0_i32_0 = arith.constant 0 : i32
    %c0_i32_1 = arith.constant 0 : i32
    return %c0_i32, %c0_i32_0 : i32, i32
  }
  func.func @transform_6(%arg0: i32) -> (i32, i32) {
    %c0_i32 = arith.constant 0 : i32
    %c0_i32_0 = arith.constant 0 : i32
    %c0_i32_1 = arith.constant 0 : i32
    return %c0_i32, %c0_i32_0 : i32, i32
  }
  func.func @transform_7(%arg0: i32) -> (i32, i32) {
    %c0_i32 = arith.constant 0 : i32
    %c0_i32_0 = arith.constant 0 : i32
    return %arg0, %c0_i32 : i32, i32
  }
}

</mosaic_0001>

<bundles_post_ra>
// kernel: _forward_impl.1
= control target key start
LH: loop header
LB: loop body
LE: loop exit
PB: predicated region body
PF: predicated region fallthrough
CT: control target
= control target key end

     0   :  { %12 = vsyncpa [#allocation3], 0  ;;  %s687_s24 = smov [#allocation2]   ;;  %s809_s0 = inlined_call_operand.vmem [shape: f32[64,16], index: 0, kind: input, shape index: {}]   ;;  %s810_s1 = inlined_call_operand.vmem [shape: bf16[16,128], index: 1, kind: input, shape index: {}]   ;;  %s811_s2 = inlined_call_operand.vmem [shape: f32[1,128], index: 2, kind: input, shape index: {}]   ;;  %s812_s3 = inlined_call_operand.vmem [shape: bf16[128,128], index: 3, kind: input, shape index: {}]   ;;  %s813_s4 = inlined_call_operand.vmem [shape: f32[1,128], index: 4, kind: input, shape index: {}]   ;;  %s814_s5 = inlined_call_operand.hbm [shape: bf16[128,128], index: 5, kind: input, shape index: {}]   ;;  %s815_s6 = inlined_call_operand.vmem [shape: f32[1,128], index: 6, kind: input, shape index: {}]   ;;  %s816_s7 = inlined_call_operand.vmem [shape: bf16[64,128], index: 7, kind: output, shape index: {}]  }
   0x1   :  { %s28_s25 = sshll.u32 %s687_s24, 4  ;;  %s29_s25 = int_to_ptr.vmem [resolvable:$true] %s28_s25 }
   0x2   :  { %s673_s26 = scalar_lea.vmem %s29_s25, 1024  ;;  %p678_p1 = scmp.lt.s32.totalorder %s29_s25, %s29_s25 }
   0x3   :  { %p674_p0 = scmp.ne.s32.totalorder %s29_s25, %s673_s26  ;;  %p679_p2 = scmp.lt.s32.totalorder %s673_s26, %s673_s26 }
   0x5   :  { %p680_p3 = por %p679_p2, %p678_p1 }
   0x7   :  { %p681_p4 = pnand %p680_p3, %p674_p0 }
   0x9   :  { %684 = shalt.err (!%p681_p4)
}
   0xa   :  { %s688_s27 = smov 64   ;;  %s689_s28 = smov 4  }
   0xb   :  { %34 = dma.hbm_to_vmem [thread:$0]  %s814_s5, 1024, %s29_s25, [#allocation3], %s688_s27, %s688_s27, %s689_s28  }
   0xc   :  { %685 = dma.done.wait [#allocation3], 1024  }
   0xd   :  { %686 = vsyncadd [#allocation3], 4294966272  ;;  %v648_v0 = vld [vmem:[%s810_s1] sm:$0xff]   ;;  %v42_v2 = vld [vmem:[%s809_s0 + $0x8] sm:$0xff]  ;;  %vm68_vm0 = vcmask 130048  }
   0xe   :  { %v41_v1 = vld [vmem:[%s809_s0] sm:$0xff]  ;;  %v43_v3 = vld [vmem:[%s809_s0 + $0x10] sm:$0xff]  ;;  %587 = vmatprep.subr.bf16.mxu0 %v648_v0  ;;  %v44_v5 = vld [vmem:[%s809_s0 + $0x18] sm:$0xff] }
   0xf   :  { %v49_v4 = vpack.c.bf16 %v42_v2, %v41_v1  ;;  %v45_v6 = vld [vmem:[%s809_s0 + $0x20] sm:$0xff]  ;;  %v46_v7 = vld [vmem:[%s809_s0 + $0x28] sm:$0xff]  ;;  %588 = vmatpush3.bf16.msra.mxu0 %v648_v0  ;;  %v50_v8 = vpack.c.bf16 %v44_v5, %v43_v3  ;;  %v649_v10 = vld [vmem:[%s812_s3 + $0x38] sm:$0xff]  }
  0x10   :  { %v51_v9 = vpack.c.bf16 %v46_v7, %v45_v6  ;;  %v650_v11 = vld [vmem:[%s812_s3 + $0x30] sm:$0xff]   ;;  %597 = vmatprep.subr.bf16.mxu1 %v649_v10  ;;  %v48_v13 = vld [vmem:[%s809_s0 + $0x38] sm:$0xff]  ;;  %v651_v14 = vld [vmem:[%s812_s3 + $0x28] sm:$0xff]  }
  0x11   :  { %589 = vmatprep.mubr.msk.bf16.mxu0 %vm68_vm0, %v49_v4  ;;  %v47_v12 = vld [vmem:[%s809_s0 + $0x30] sm:$0xff]  ;;  %598 = vmatpush3.bf16.msra.mxu1 %v649_v10  ;;  %v652_v16 = vld [vmem:[%s812_s3 + $0x20] sm:$0xff]   ;;  %v653_v17 = vld [vmem:[%s812_s3 + $0x18] sm:$0xff]  }
  0x12   :  { %590 = vmatmul.mubr.msk.bf16.vlgmr.msra.gmra.mxu0 %vm68_vm0, %v50_v8  ;;  %599 = vmatprep.subr.bf16.mxu1 %v650_v11  ;;  %v52_v15 = vpack.c.bf16 %v48_v13, %v47_v12  ;;  %v654_v18 = vld [vmem:[%s812_s3 + $0x10] sm:$0xff]   ;;  %v655_v19 = vld [vmem:[%s812_s3 + $0x8] sm:$0xff]   ;;  %v656_v20 = vld [vmem:[%s812_s3] sm:$0xff]  }
  0x13   :  { %593 = vmatprep.mubr.msk.bf16.mxu0 %vm68_vm0, %v51_v9  ;;  %v657_v21 = vld [vmem:[#allocation2 + $0x38] sm:$0xff]   ;;  %v658_v22 = vld [vmem:[#allocation2 + $0x30] sm:$0xff]   ;;  %v659_v23 = vld [vmem:[#allocation2 + $0x28] sm:$0xff]  }
  0x14   :  { %621 = vmatprep.subr.bf16.mxu0 %v657_v21  ;;  %v660_v24 = vld [vmem:[#allocation2 + $0x20] sm:$0xff]   ;;  %v661_v25 = vld [vmem:[#allocation2 + $0x18] sm:$0xff]   ;;  %v662_v55 = vld [vmem:[#allocation2 + $0x10] sm:$0xff]  }
  0x15   :  { %600 = vmatpush3.bf16.msra.mxu1 %v650_v11  ;;  %622 = vmatpush3.bf16.msra.mxu0 %v657_v21  ;;  %v495_v28 = vld [vmem:[%s811_s2] ss:$0 sm:$0xff]  ;;  %v663_v56 = vld [vmem:[#allocation2 + $0x8] sm:$0xff]  }
  0x16   :  { %601 = vmatprep.subr.bf16.mxu1 %v651_v14  ;;  %623 = vmatprep.subr.bf16.mxu0 %v658_v22  ;;  %v664_v57 = vld [vmem:[#allocation2] sm:$0xff]  }
  0x17   :  { %v501_v60 = vld [vmem:[%s813_s4] ss:$0 sm:$0xff] }
  0x19   :  { %602 = vmatpush3.bf16.msra.mxu1 %v651_v14  ;;  %624 = vmatpush3.bf16.msra.mxu0 %v658_v22 }
  0x1a   :  { %594 = vmatmul.mubr.msk.bf16.gmra.mxu0 %vm68_vm0, %v52_v15  ;;  %603 = vmatprep.subr.bf16.mxu1 %v652_v16 }
  0x1b   :  { %625 = vmatprep.subr.bf16.mxu0 %v659_v23 }
  0x1d   :  { %604 = vmatpush3.bf16.msra.mxu1 %v652_v16  ;;  %626 = vmatpush3.bf16.msra.mxu0 %v659_v23 }
  0x1e   :  { %605 = vmatprep.subr.bf16.mxu1 %v653_v17  ;;  %627 = vmatprep.subr.bf16.mxu0 %v660_v24 }
  0x21   :  { %606 = vmatpush3.bf16.msra.mxu1 %v653_v17  ;;  %628 = vmatpush3.bf16.msra.mxu0 %v660_v24  ;;  %v510_v24 = vld [vmem:[%s815_s6] ss:$0 sm:$0xff] }
  0x22   :  { %607 = vmatprep.subr.bf16.mxu1 %v654_v18  ;;  %629 = vmatprep.subr.bf16.mxu0 %v661_v25 }
  0x25   :  { %608 = vmatpush3.bf16.msra.mxu1 %v654_v18  ;;  %630 = vmatpush3.bf16.msra.mxu0 %v661_v25 }
  0x26   :  { %609 = vmatprep.subr.bf16.mxu1 %v655_v19  ;;  %631 = vmatprep.subr.bf16.mxu0 %v662_v55 }
  0x29   :  { %610 = vmatpush3.bf16.msra.mxu1 %v655_v19  ;;  %632 = vmatpush3.bf16.msra.mxu0 %v662_v55 }
  0x2a   :  { %611 = vmatprep.subr.bf16.mxu1 %v656_v20  ;;  %633 = vmatprep.subr.bf16.mxu0 %v663_v56 }
  0x2d   :  { %612 = vmatpush3.bf16.msra.mxu1 %v656_v20  ;;  %634 = vmatpush3.bf16.msra.mxu0 %v663_v56 }
  0x2e   :  { %635 = vmatprep.subr.bf16.mxu0 %v664_v57 }
  0x31   :  { %636 = vmatpush3.bf16.msra.mxu0 %v664_v57 }
  0xd2   :  { %v591_v26 = vpop.f32.mrf.mxu0 }
  0xd3   :  { %v124_v32 = vadd.f32 %v591_v26, %v495_v28 }
  0xd4   :  { %v115_v27 = vpop.f32.mrf.mxu0 }
  0xd5   :  { %v116_v30 = vadd.f32 %v495_v28, %v115_v27  ;;  %v148_v39 = vmax.f32 %v124_v32, 0.0 }
  0xd6   :  { %v592_v29 = vpop.f32.mrf.mxu0 }
  0xd7   :  { %v127_v31 = vadd.f32 %v592_v29, %v495_v28  ;;  %v146_v37 = vmax.f32 %v116_v30, 0.0 }
  0xd8   :  { %v118_v33 = vpop.f32.mrf.mxu0 }
  0xd9   :  { %v119_v34 = vadd.f32 %v495_v28, %v118_v33  ;;  %v149_v35 = vmax.f32 %v127_v31, 0.0 }
  0xda   :  { %v595_v36 = vpop.f32.mrf.mxu0 }
  0xdb   :  { %v147_v38 = vmax.f32 %v119_v34, 0.0  ;;  %v155_v42 = vpack.c.bf16 %v149_v35, %v148_v39  ;;  %v140_v46 = vadd.f32 %v595_v36, %v495_v28 }
  0xdc   :  { %v131_v40 = vpop.f32.mrf.mxu0 }
  0xdd   :  { %v154_v41 = vpack.c.bf16 %v147_v38, %v146_v37  ;;  %v132_v44 = vadd.f32 %v495_v28, %v131_v40  ;;  %v152_v52 = vmax.f32 %v140_v46, 0.0 }
  0xde   :  { %v596_v43 = vpop.f32.mrf.mxu0 }
  0xdf   :  { %v143_v45 = vadd.f32 %v596_v43, %v495_v28  ;;  %613 = vmatprep.mubr.bf16.mxu1 %v154_v41  ;;  %v150_v50 = vmax.f32 %v132_v44, 0.0 }
  0xe0   :  { %v134_v47 = vpop.f32.mrf.mxu0  ;;  %614 = vmatmul.mubr.bf16.vlgmr.msra.gmra.mxu1 %v155_v42 }
  0xe1   :  { %v135_v48 = vadd.f32 %v495_v28, %v134_v47  ;;  %v153_v49 = vmax.f32 %v143_v45, 0.0 }
  0xe3   :  { %v151_v51 = vmax.f32 %v135_v48, 0.0  ;;  %v157_v54 = vpack.c.bf16 %v153_v49, %v152_v52 }
  0xe5   :  { %v156_v53 = vpack.c.bf16 %v151_v51, %v150_v50 }
  0xe7   :  { %617 = vmatprep.mubr.bf16.mxu1 %v156_v53 }
  0xe8   :  { %618 = vmatmul.mubr.bf16.gmra.mxu1 %v157_v54 }
 0x1a0   :  { %v615_v58 = vpop.f32.mrf.mxu1 }
 0x1a1   :  { %v272_v0 = vadd.f32 %v615_v58, %v501_v60 }
 0x1a2   :  { %v263_v59 = vpop.f32.mrf.mxu1 }
 0x1a3   :  { %v264_v62 = vadd.f32 %v501_v60, %v263_v59  ;;  %v296_v7 = vmax.f32 %v272_v0, 0.0 }
 0x1a4   :  { %v616_v61 = vpop.f32.mrf.mxu1 }
 0x1a5   :  { %v275_v63 = vadd.f32 %v616_v61, %v501_v60  ;;  %v294_v5 = vmax.f32 %v264_v62, 0.0 }
 0x1a6   :  { %v266_v1 = vpop.f32.mrf.mxu1 }
 0x1a7   :  { %v267_v2 = vadd.f32 %v501_v60, %v266_v1  ;;  %v297_v3 = vmax.f32 %v275_v63, 0.0 }
 0x1a8   :  { %v619_v4 = vpop.f32.mrf.mxu1 }
 0x1a9   :  { %v295_v6 = vmax.f32 %v267_v2, 0.0  ;;  %v303_v10 = vpack.c.bf16 %v297_v3, %v296_v7  ;;  %v288_v14 = vadd.f32 %v619_v4, %v501_v60 }
 0x1aa   :  { %v279_v8 = vpop.f32.mrf.mxu1 }
 0x1ab   :  { %v302_v9 = vpack.c.bf16 %v295_v6, %v294_v5  ;;  %v280_v12 = vadd.f32 %v501_v60, %v279_v8  ;;  %v300_v20 = vmax.f32 %v288_v14, 0.0 }
 0x1ac   :  { %v620_v11 = vpop.f32.mrf.mxu1 }
 0x1ad   :  { %v291_v13 = vadd.f32 %v620_v11, %v501_v60  ;;  %637 = vmatprep.mubr.bf16.mxu0 %v302_v9  ;;  %v298_v18 = vmax.f32 %v280_v12, 0.0 }
 0x1ae   :  { %v282_v15 = vpop.f32.mrf.mxu1  ;;  %638 = vmatmul.mubr.bf16.vlgmr.msra.gmra.mxu0 %v303_v10 }
 0x1af   :  { %v283_v16 = vadd.f32 %v501_v60, %v282_v15  ;;  %v301_v17 = vmax.f32 %v291_v13, 0.0 }
 0x1b1   :  { %v299_v19 = vmax.f32 %v283_v16, 0.0  ;;  %v305_v22 = vpack.c.bf16 %v301_v17, %v300_v20 }
 0x1b3   :  { %v304_v21 = vpack.c.bf16 %v299_v19, %v298_v18 }
 0x1b5   :  { %641 = vmatprep.mubr.bf16.mxu0 %v304_v21 }
 0x1b6   :  { %642 = vmatmul.mubr.bf16.gmra.mxu0 %v305_v22 }
 0x26e   :  { %v639_v23 = vpop.f32.mrf.mxu0 }
 0x26f   :  { %v420_v26 = vadd.f32 %v639_v23, %v510_v24 }
 0x270   :  { %v411_v25 = vpop.f32.mrf.mxu0 }
 0x271   :  { %v412_v28 = vadd.f32 %v510_v24, %v411_v25  ;;  %v444_v31 = vmax.f32 %v420_v26, 0.0 }
 0x272   :  { %v640_v27 = vpop.f32.mrf.mxu0 }
 0x273   :  { %v423_v29 = vadd.f32 %v640_v27, %v510_v24  ;;  %v442_v35 = vmax.f32 %v412_v28, 0.0 }
 0x274   :  { %v414_v30 = vpop.f32.mrf.mxu0 }
 0x275   :  { %v445_v32 = vmax.f32 %v423_v29, 0.0  ;;  %v415_v33 = vadd.f32 %v510_v24, %v414_v30 }
 0x276   :  { %v643_v34 = vpop.f32.mrf.mxu0 }
 0x277   :  { %v543_v36 = vpack.c.bf16 %v445_v32, %v444_v31  ;;  %v443_v37 = vmax.f32 %v415_v33, 0.0  ;;  %v436_v40 = vadd.f32 %v643_v34, %v510_v24 }
 0x278   :  { %v427_v38 = vpop.f32.mrf.mxu0 }
 0x279   :  { %555 = vst [vmem:[%s816_s7 + $0x8] sm:$0xff] %v543_v36   ;;  %v538_v39 = vpack.c.bf16 %v443_v37, %v442_v35  ;;  %v428_v42 = vadd.f32 %v510_v24, %v427_v38  ;;  %v448_v45 = vmax.f32 %v436_v40, 0.0 }
 0x27a   :  { %v644_v41 = vpop.f32.mrf.mxu0 }
 0x27b   :  { %539 = vst [vmem:[%s816_s7] sm:$0xff] %v538_v39   ;;  %v439_v43 = vadd.f32 %v644_v41, %v510_v24  ;;  %v446_v48 = vmax.f32 %v428_v42, 0.0 }
 0x27c   :  { %v430_v44 = vpop.f32.mrf.mxu0 }
 0x27d   :  { %v449_v46 = vmax.f32 %v439_v43, 0.0  ;;  %v431_v47 = vadd.f32 %v510_v24, %v430_v44 }
 0x27f   :  { %v553_v49 = vpack.c.bf16 %v449_v46, %v448_v45  ;;  %v447_v50 = vmax.f32 %v431_v47, 0.0 }
 0x281   :  { %557 = vst [vmem:[%s816_s7 + $0x18] sm:$0xff] %v553_v49   ;;  %v548_v51 = vpack.c.bf16 %v447_v50, %v446_v48 }
 0x283   :  { %556 = vst [vmem:[%s816_s7 + $0x10] sm:$0xff] %v548_v51  }
 0x284   :  { %494 = vsyncpa [#allocation3], 1 }

// kernel: _forward_impl.1
= control target key start
LH: loop header
LB: loop body
LE: loop exit
PB: predicated region body
PF: predicated region fallthrough
CT: control target
= control target key end

     0   :  { %12 = vsyncpa [#allocation3], 0  ;;  %s687_s24 = smov [#allocation2]   ;;  %s809_s0 = inlined_call_operand.vmem [shape: f32[64,16], index: 0, kind: input, shape index: {}]   ;;  %s810_s1 = inlined_call_operand.vmem [shape: bf16[16,128], index: 1, kind: input, shape index: {}]   ;;  %s811_s2 = inlined_call_operand.vmem [shape: f32[1,128], index: 2, kind: input, shape index: {}]   ;;  %s812_s3 = inlined_call_operand.vmem [shape: bf16[128,128], index: 3, kind: input, shape index: {}]   ;;  %s813_s4 = inlined_call_operand.vmem [shape: f32[1,128], index: 4, kind: input, shape index: {}]   ;;  %s814_s5 = inlined_call_operand.hbm [shape: bf16[128,128], index: 5, kind: input, shape index: {}]   ;;  %s815_s6 = inlined_call_operand.vmem [shape: f32[1,128], index: 6, kind: input, shape index: {}]   ;;  %s816_s7 = inlined_call_operand.vmem [shape: bf16[64,128], index: 7, kind: output, shape index: {}]  }
   0x1   :  { %s28_s25 = sshll.u32 %s687_s24, 4  ;;  %s29_s25 = int_to_ptr.vmem [resolvable:$true] %s28_s25 }
   0x2   :  { %s673_s26 = scalar_lea.vmem %s29_s25, 1024  ;;  %p678_p1 = scmp.lt.s32.totalorder %s29_s25, %s29_s25 }
   0x3   :  { %p674_p0 = scmp.ne.s32.totalorder %s29_s25, %s673_s26  ;;  %p679_p2 = scmp.lt.s32.totalorder %s673_s26, %s673_s26 }
   0x5   :  { %p680_p3 = por %p679_p2, %p678_p1 }
   0x7   :  { %p681_p4 = pnand %p680_p3, %p674_p0 }
   0x9   :  { %684 = shalt.err (!%p681_p4)
}
   0xa   :  { %s688_s27 = smov 64   ;;  %s689_s28 = smov 4  }
   0xb   :  { %34 = dma.hbm_to_vmem [thread:$0]  %s814_s5, 1024, %s29_s25, [#allocation3], %s688_s27, %s688_s27, %s689_s28  }
   0xc   :  { %685 = dma.done.wait [#allocation3], 1024  }
   0xd   :  { %686 = vsyncadd [#allocation3], 4294966272  ;;  %v648_v0 = vld [vmem:[%s810_s1] sm:$0xff]   ;;  %v42_v2 = vld [vmem:[%s809_s0 + $0x8] sm:$0xff]  ;;  %vm68_vm0 = vcmask 130048  }
   0xe   :  { %v41_v1 = vld [vmem:[%s809_s0] sm:$0xff]  ;;  %v43_v3 = vld [vmem:[%s809_s0 + $0x10] sm:$0xff]  ;;  %587 = vmatprep.subr.bf16.mxu0 %v648_v0  ;;  %v44_v5 = vld [vmem:[%s809_s0 + $0x18] sm:$0xff] }
   0xf   :  { %v49_v4 = vpack.c.bf16 %v42_v2, %v41_v1  ;;  %v45_v6 = vld [vmem:[%s809_s0 + $0x20] sm:$0xff]  ;;  %v46_v7 = vld [vmem:[%s809_s0 + $0x28] sm:$0xff]  ;;  %588 = vmatpush3.bf16.msra.mxu0 %v648_v0  ;;  %v50_v8 = vpack.c.bf16 %v44_v5, %v43_v3  ;;  %v649_v10 = vld [vmem:[%s812_s3 + $0x38] sm:$0xff]  }
  0x10   :  { %v51_v9 = vpack.c.bf16 %v46_v7, %v45_v6  ;;  %v650_v11 = vld [vmem:[%s812_s3 + $0x30] sm:$0xff]   ;;  %597 = vmatprep.subr.bf16.mxu1 %v649_v10  ;;  %v48_v13 = vld [vmem:[%s809_s0 + $0x38] sm:$0xff]  ;;  %v651_v14 = vld [vmem:[%s812_s3 + $0x28] sm:$0xff]  }
  0x11   :  { %589 = vmatprep.mubr.msk.bf16.mxu0 %vm68_vm0, %v49_v4  ;;  %v47_v12 = vld [vmem:[%s809_s0 + $0x30] sm:$0xff]  ;;  %598 = vmatpush3.bf16.msra.mxu1 %v649_v10  ;;  %v652_v16 = vld [vmem:[%s812_s3 + $0x20] sm:$0xff]   ;;  %v653_v17 = vld [vmem:[%s812_s3 + $0x18] sm:$0xff]  }
  0x12   :  { %590 = vmatmul.mubr.msk.bf16.vlgmr.msra.gmra.mxu0 %vm68_vm0, %v50_v8  ;;  %599 = vmatprep.subr.bf16.mxu1 %v650_v11  ;;  %v52_v15 = vpack.c.bf16 %v48_v13, %v47_v12  ;;  %v654_v18 = vld [vmem:[%s812_s3 + $0x10] sm:$0xff]   ;;  %v655_v19 = vld [vmem:[%s812_s3 + $0x8] sm:$0xff]   ;;  %v656_v20 = vld [vmem:[%s812_s3] sm:$0xff]  }
  0x13   :  { %593 = vmatprep.mubr.msk.bf16.mxu0 %vm68_vm0, %v51_v9  ;;  %v657_v21 = vld [vmem:[#allocation2 + $0x38] sm:$0xff]   ;;  %v658_v22 = vld [vmem:[#allocation2 + $0x30] sm:$0xff]   ;;  %v659_v23 = vld [vmem:[#allocation2 + $0x28] sm:$0xff]  }
  0x14   :  { %621 = vmatprep.subr.bf16.mxu0 %v657_v21  ;;  %v660_v24 = vld [vmem:[#allocation2 + $0x20] sm:$0xff]   ;;  %v661_v25 = vld [vmem:[#allocation2 + $0x18] sm:$0xff]   ;;  %v662_v55 = vld [vmem:[#allocation2 + $0x10] sm:$0xff]  }
  0x15   :  { %600 = vmatpush3.bf16.msra.mxu1 %v650_v11  ;;  %622 = vmatpush3.bf16.msra.mxu0 %v657_v21  ;;  %v495_v28 = vld [vmem:[%s811_s2] ss:$0 sm:$0xff]  ;;  %v663_v56 = vld [vmem:[#allocation2 + $0x8] sm:$0xff]  }
  0x16   :  { %601 = vmatprep.subr.bf16.mxu1 %v651_v14  ;;  %623 = vmatprep.subr.bf16.mxu0 %v658_v22  ;;  %v664_v57 = vld [vmem:[#allocation2] sm:$0xff]  }
  0x17   :  { %v501_v60 = vld [vmem:[%s813_s4] ss:$0 sm:$0xff] }
  0x19   :  { %602 = vmatpush3.bf16.msra.mxu1 %v651_v14  ;;  %624 = vmatpush3.bf16.msra.mxu0 %v658_v22 }
  0x1a   :  { %594 = vmatmul.mubr.msk.bf16.gmra.mxu0 %vm68_vm0, %v52_v15  ;;  %603 = vmatprep.subr.bf16.mxu1 %v652_v16 }
  0x1b   :  { %625 = vmatprep.subr.bf16.mxu0 %v659_v23 }
  0x1d   :  { %604 = vmatpush3.bf16.msra.mxu1 %v652_v16  ;;  %626 = vmatpush3.bf16.msra.mxu0 %v659_v23 }
  0x1e   :  { %605 = vmatprep.subr.bf16.mxu1 %v653_v17  ;;  %627 = vmatprep.subr.bf16.mxu0 %v660_v24 }
  0x21   :  { %606 = vmatpush3.bf16.msra.mxu1 %v653_v17  ;;  %628 = vmatpush3.bf16.msra.mxu0 %v660_v24  ;;  %v510_v24 = vld [vmem:[%s815_s6] ss:$0 sm:$0xff] }
  0x22   :  { %607 = vmatprep.subr.bf16.mxu1 %v654_v18  ;;  %629 = vmatprep.subr.bf16.mxu0 %v661_v25 }
  0x25   :  { %608 = vmatpush3.bf16.msra.mxu1 %v654_v18  ;;  %630 = vmatpush3.bf16.msra.mxu0 %v661_v25 }
  0x26   :  { %609 = vmatprep.subr.bf16.mxu1 %v655_v19  ;;  %631 = vmatprep.subr.bf16.mxu0 %v662_v55 }
  0x29   :  { %610 = vmatpush3.bf16.msra.mxu1 %v655_v19  ;;  %632 = vmatpush3.bf16.msra.mxu0 %v662_v55 }
  0x2a   :  { %611 = vmatprep.subr.bf16.mxu1 %v656_v20  ;;  %633 = vmatprep.subr.bf16.mxu0 %v663_v56 }
  0x2d   :  { %612 = vmatpush3.bf16.msra.mxu1 %v656_v20  ;;  %634 = vmatpush3.bf16.msra.mxu0 %v663_v56 }
  0x2e   :  { %635 = vmatprep.subr.bf16.mxu0 %v664_v57 }
  0x31   :  { %636 = vmatpush3.bf16.msra.mxu0 %v664_v57 }
  0xd2   :  { %v591_v26 = vpop.f32.mrf.mxu0 }
  0xd3   :  { %v124_v32 = vadd.f32 %v591_v26, %v495_v28 }
  0xd4   :  { %v115_v27 = vpop.f32.mrf.mxu0 }
  0xd5   :  { %v116_v30 = vadd.f32 %v495_v28, %v115_v27  ;;  %v148_v39 = vmax.f32 %v124_v32, 0.0 }
  0xd6   :  { %v592_v29 = vpop.f32.mrf.mxu0 }
  0xd7   :  { %v127_v31 = vadd.f32 %v592_v29, %v495_v28  ;;  %v146_v37 = vmax.f32 %v116_v30, 0.0 }
  0xd8   :  { %v118_v33 = vpop.f32.mrf.mxu0 }
  0xd9   :  { %v119_v34 = vadd.f32 %v495_v28, %v118_v33  ;;  %v149_v35 = vmax.f32 %v127_v31, 0.0 }
  0xda   :  { %v595_v36 = vpop.f32.mrf.mxu0 }
  0xdb   :  { %v147_v38 = vmax.f32 %v119_v34, 0.0  ;;  %v155_v42 = vpack.c.bf16 %v149_v35, %v148_v39  ;;  %v140_v46 = vadd.f32 %v595_v36, %v495_v28 }
  0xdc   :  { %v131_v40 = vpop.f32.mrf.mxu0 }
  0xdd   :  { %v154_v41 = vpack.c.bf16 %v147_v38, %v146_v37  ;;  %v132_v44 = vadd.f32 %v495_v28, %v131_v40  ;;  %v152_v52 = vmax.f32 %v140_v46, 0.0 }
  0xde   :  { %v596_v43 = vpop.f32.mrf.mxu0 }
  0xdf   :  { %v143_v45 = vadd.f32 %v596_v43, %v495_v28  ;;  %613 = vmatprep.mubr.bf16.mxu1 %v154_v41  ;;  %v150_v50 = vmax.f32 %v132_v44, 0.0 }
  0xe0   :  { %v134_v47 = vpop.f32.mrf.mxu0  ;;  %614 = vmatmul.mubr.bf16.vlgmr.msra.gmra.mxu1 %v155_v42 }
  0xe1   :  { %v135_v48 = vadd.f32 %v495_v28, %v134_v47  ;;  %v153_v49 = vmax.f32 %v143_v45, 0.0 }
  0xe3   :  { %v151_v51 = vmax.f32 %v135_v48, 0.0  ;;  %v157_v54 = vpack.c.bf16 %v153_v49, %v152_v52 }
  0xe5   :  { %v156_v53 = vpack.c.bf16 %v151_v51, %v150_v50 }
  0xe7   :  { %617 = vmatprep.mubr.bf16.mxu1 %v156_v53 }
  0xe8   :  { %618 = vmatmul.mubr.bf16.gmra.mxu1 %v157_v54 }
 0x1a0   :  { %v615_v58 = vpop.f32.mrf.mxu1 }
 0x1a1   :  { %v272_v0 = vadd.f32 %v615_v58, %v501_v60 }
 0x1a2   :  { %v263_v59 = vpop.f32.mrf.mxu1 }
 0x1a3   :  { %v264_v62 = vadd.f32 %v501_v60, %v263_v59  ;;  %v296_v7 = vmax.f32 %v272_v0, 0.0 }
 0x1a4   :  { %v616_v61 = vpop.f32.mrf.mxu1 }
 0x1a5   :  { %v275_v63 = vadd.f32 %v616_v61, %v501_v60  ;;  %v294_v5 = vmax.f32 %v264_v62, 0.0 }
 0x1a6   :  { %v266_v1 = vpop.f32.mrf.mxu1 }
 0x1a7   :  { %v267_v2 = vadd.f32 %v501_v60, %v266_v1  ;;  %v297_v3 = vmax.f32 %v275_v63, 0.0 }
 0x1a8   :  { %v619_v4 = vpop.f32.mrf.mxu1 }
 0x1a9   :  { %v295_v6 = vmax.f32 %v267_v2, 0.0  ;;  %v303_v10 = vpack.c.bf16 %v297_v3, %v296_v7  ;;  %v288_v14 = vadd.f32 %v619_v4, %v501_v60 }
 0x1aa   :  { %v279_v8 = vpop.f32.mrf.mxu1 }
 0x1ab   :  { %v302_v9 = vpack.c.bf16 %v295_v6, %v294_v5  ;;  %v280_v12 = vadd.f32 %v501_v60, %v279_v8  ;;  %v300_v20 = vmax.f32 %v288_v14, 0.0 }
 0x1ac   :  { %v620_v11 = vpop.f32.mrf.mxu1 }
 0x1ad   :  { %v291_v13 = vadd.f32 %v620_v11, %v501_v60  ;;  %637 = vmatprep.mubr.bf16.mxu0 %v302_v9  ;;  %v298_v18 = vmax.f32 %v280_v12, 0.0 }
 0x1ae   :  { %v282_v15 = vpop.f32.mrf.mxu1  ;;  %638 = vmatmul.mubr.bf16.vlgmr.msra.gmra.mxu0 %v303_v10 }
 0x1af   :  { %v283_v16 = vadd.f32 %v501_v60, %v282_v15  ;;  %v301_v17 = vmax.f32 %v291_v13, 0.0 }
 0x1b1   :  { %v299_v19 = vmax.f32 %v283_v16, 0.0  ;;  %v305_v22 = vpack.c.bf16 %v301_v17, %v300_v20 }
 0x1b3   :  { %v304_v21 = vpack.c.bf16 %v299_v19, %v298_v18 }
 0x1b5   :  { %641 = vmatprep.mubr.bf16.mxu0 %v304_v21 }
 0x1b6   :  { %642 = vmatmul.mubr.bf16.gmra.mxu0 %v305_v22 }
 0x26e   :  { %v639_v23 = vpop.f32.mrf.mxu0 }
 0x26f   :  { %v420_v26 = vadd.f32 %v639_v23, %v510_v24 }
 0x270   :  { %v411_v25 = vpop.f32.mrf.mxu0 }
 0x271   :  { %v412_v28 = vadd.f32 %v510_v24, %v411_v25  ;;  %v444_v31 = vmax.f32 %v420_v26, 0.0 }
 0x272   :  { %v640_v27 = vpop.f32.mrf.mxu0 }
 0x273   :  { %v423_v29 = vadd.f32 %v640_v27, %v510_v24  ;;  %v442_v35 = vmax.f32 %v412_v28, 0.0 }
 0x274   :  { %v414_v30 = vpop.f32.mrf.mxu0 }
 0x275   :  { %v445_v32 = vmax.f32 %v423_v29, 0.0  ;;  %v415_v33 = vadd.f32 %v510_v24, %v414_v30 }
 0x276   :  { %v643_v34 = vpop.f32.mrf.mxu0 }
 0x277   :  { %v543_v36 = vpack.c.bf16 %v445_v32, %v444_v31  ;;  %v443_v37 = vmax.f32 %v415_v33, 0.0  ;;  %v436_v40 = vadd.f32 %v643_v34, %v510_v24 }
 0x278   :  { %v427_v38 = vpop.f32.mrf.mxu0 }
 0x279   :  { %555 = vst [vmem:[%s816_s7 + $0x8] sm:$0xff] %v543_v36   ;;  %v538_v39 = vpack.c.bf16 %v443_v37, %v442_v35  ;;  %v428_v42 = vadd.f32 %v510_v24, %v427_v38  ;;  %v448_v45 = vmax.f32 %v436_v40, 0.0 }
 0x27a   :  { %v644_v41 = vpop.f32.mrf.mxu0 }
 0x27b   :  { %539 = vst [vmem:[%s816_s7] sm:$0xff] %v538_v39   ;;  %v439_v43 = vadd.f32 %v644_v41, %v510_v24  ;;  %v446_v48 = vmax.f32 %v428_v42, 0.0 }
 0x27c   :  { %v430_v44 = vpop.f32.mrf.mxu0 }
 0x27d   :  { %v449_v46 = vmax.f32 %v439_v43, 0.0  ;;  %v431_v47 = vadd.f32 %v510_v24, %v430_v44 }
 0x27f   :  { %v553_v49 = vpack.c.bf16 %v449_v46, %v448_v45  ;;  %v447_v50 = vmax.f32 %v431_v47, 0.0 }
 0x281   :  { %557 = vst [vmem:[%s816_s7 + $0x18] sm:$0xff] %v553_v49   ;;  %v548_v51 = vpack.c.bf16 %v447_v50, %v446_v48 }
 0x283   :  { %556 = vst [vmem:[%s816_s7 + $0x10] sm:$0xff] %v548_v51  }
 0x284   :  { %494 = vsyncpa [#allocation3], 1 }

</bundles_post_ra>
